<compile_context>
chip_gen: v7x
topology: tpu7x:2x2x1
jax: 0.10.0
libtpu: 0.0.40
codegen_flags: <defaults>
</compile_context>

<pallas_src>
import jax
import jax.numpy as jnp
from jax.experimental import pallas as pl
from jax.experimental.pallas import tpu as pltpu


def _critic_kernel_n1(x_ref, w1_ref, b1_ref, w2row_ref, b2_ref, out_ref):
    """num_output == 1 fast path: MXU fc1 + VPU mul + lane reduce for the head."""
    # fc1 on the MXU: (TB, num_input) @ (num_input, Np) -> f32 accumulate.
    h = jnp.dot(x_ref[...], w1_ref[...], preferred_element_type=jnp.float32)
    h = jnp.maximum(h + b1_ref[...], 0.0)          # bias + ReLU on the VPU
    # Value head: N=1 matmul replaced by elementwise mul + lane reduction
    # (avoids a second MXU push/pop sitting on the critical path).
    v = jnp.sum(h * w2row_ref[...], axis=-1, keepdims=True)
    out_ref[...] = (v + b2_ref[0, 0]).astype(out_ref.dtype)


def _critic_kernel_general(x_ref, w1_ref, b1_ref, w2_ref, b2_ref, out_ref):
    """General num_output fallback: keep the second matmul on the MXU."""
    h = jnp.dot(x_ref[...], w1_ref[...], preferred_element_type=jnp.float32)
    h = jnp.maximum(h + b1_ref[...], 0.0)
    v = jnp.dot(h.astype(w2_ref.dtype), w2_ref[...],
                preferred_element_type=jnp.float32)
    out_ref[...] = (v + b2_ref[...]).astype(out_ref.dtype)


def critic_forward(x, w1, b1, w2, b2, *, batch_tile=256):
    """relu(x @ w1 + b1) @ w2 + b2, batch-tiled, with lane-aligned hidden dim."""
    B, num_input = x.shape
    node_num, num_output = w2.shape

    # Lane-align the hidden dimension (zero padding does not change the math:
    # relu(0 + 0) = 0 and padded W2 rows are zero).
    np_hidden = max(128, pl.cdiv(node_num, 128) * 128)
    if np_hidden != node_num:
        pad = np_hidden - node_num
        w1 = jnp.pad(w1, ((0, 0), (0, pad)))
        b1 = jnp.pad(b1, ((0, 0), (0, pad)))
        w2 = jnp.pad(w2, ((0, pad), (0, 0)))

    # Batch tiling: weights (~32x128 + 128 f32) trivially stay resident; only x
    # streams.  Edge tiles are handled by Pallas' masked stores.
    tb = min(batch_tile, B)
    grid = (pl.cdiv(B, tb),)

    x_spec = pl.BlockSpec((tb, num_input), lambda i: (i, 0))
    out_spec = pl.BlockSpec((tb, num_output), lambda i: (i, 0))
    w1_spec = pl.BlockSpec(w1.shape, lambda i: (0, 0))      # resident across tiles
    b1_spec = pl.BlockSpec(b1.shape, lambda i: (0, 0))

    compiler_params = pltpu.CompilerParams(
        dimension_semantics=("parallel",))                  # 2x on v7x (2 TCs)

    if num_output == 1:
        w2row = w2.T                      # (1, np_hidden) row for VPU mul + reduce
        b2_scalar = b2.reshape(1, 1)      # scalar bias -> SMEM
        return pl.pallas_call(
            _critic_kernel_n1,
            out_shape=jax.ShapeDtypeStruct((B, 1), x.dtype),
            grid=grid,
            in_specs=[
                x_spec,
                w1_spec,
                b1_spec,
                pl.BlockSpec(w2row.shape, lambda i: (0, 0)),
                pl.BlockSpec(memory_space=pltpu.MemorySpace.SMEM),
            ],
            out_specs=out_spec,
            compiler_params=compiler_params,
        )(x, w1, b1, w2row, b2_scalar)

    # num_output > 1: keep the second matmul on the MXU.
    return pl.pallas_call(
        _critic_kernel_general,
        out_shape=jax.ShapeDtypeStruct((B, num_output), x.dtype),
        grid=grid,
        in_specs=[
            x_spec,
            w1_spec,
            b1_spec,
            pl.BlockSpec(w2.shape, lambda i: (0, 0)),
            pl.BlockSpec(b2.shape, lambda i: (0, 0)),
        ],
        out_specs=out_spec,
        compiler_params=compiler_params,
    )(x, w1, b1, w2, b2)


def init_critic_params(key, num_input, node_num=100, num_output=1):
    """Deterministic init mimicking nn.Linear default (uniform +/- 1/sqrt(fan_in))."""
    k1, k2, k3, k4 = jax.random.split(key, 4)
    bound1 = 1.0 / jnp.sqrt(jnp.float32(num_input))
    bound2 = 1.0 / jnp.sqrt(jnp.float32(node_num))
    w1 = jax.random.uniform(k1, (num_input, node_num), jnp.float32, -bound1, bound1)
    b1 = jax.random.uniform(k2, (1, node_num), jnp.float32, -bound1, bound1)
    w2 = jax.random.uniform(k3, (node_num, num_output), jnp.float32, -bound2, bound2)
    b2 = jax.random.uniform(k4, (1, num_output), jnp.float32, -bound2, bound2)
    return w1, b1, w2, b2


if __name__ == "__main__":
    key = jax.random.PRNGKey(0)
    kx, kp = jax.random.split(key)

    # Small shapes consistent with the module; B=64 with batch_tile=32 exercises
    # the batch grid (2 tiles) while keeping everything tiny.
    B, num_input, node_num, num_output = 64, 32, 100, 1
    x = jax.random.normal(kx, (B, num_input), jnp.float32)
    w1, b1, w2, b2 = init_critic_params(kp, num_input, node_num, num_output)

    out = critic_forward(x, w1, b1, w2, b2, batch_tile=32)
    out = jax.block_until_ready(out)

    # Pure-JAX reference against the UNPADDED parameters.
    ref = jnp.maximum(x @ w1 + b1, 0.0) @ w2 + b2
    assert out.shape == (B, num_output)
    assert jnp.allclose(out, ref, atol=1e-5, rtol=1e-5)

    # TODO(synk): output kept as (B, 1) to match the PyTorch contract; a
    # lane-dense (1, B) layout would be preferable if the consumer allows it.
    print("KERNEL_OK")
</pallas_src>

<mosaic_0001>
module attributes {stable_mosaic.version = 11 : i64} {
  func.func @_critic_kernel_n1(%arg0: i32, %arg1: memref<32x32xf32, #tpu.memory_space<vmem>>, %arg2: memref<32x128xf32, #tpu.memory_space<vmem>>, %arg3: memref<1x128xf32, #tpu.memory_space<vmem>>, %arg4: memref<1x128xf32, #tpu.memory_space<vmem>>, %arg5: memref<1x1xf32, #tpu.memory_space<smem>>, %arg6: memref<32x1xf32, #tpu.memory_space<vmem>>) attributes {dimension_semantics = [#tpu.dimension_semantics<parallel>], iteration_bounds = array<i64: 2>, scalar_prefetch = 0 : i64, scratch_operands = 0 : i64, tpu.core_type = #tpu.core_type<tc>, window_params = [{transform_indices = @transform_0, window_bounds = array<i64: 32, 32>}, {pipeline_mode = #tpu.pipeline_mode<synchronous>, transform_indices = @transform_1, window_bounds = array<i64: 32, 128>}, {pipeline_mode = #tpu.pipeline_mode<synchronous>, transform_indices = @transform_2, window_bounds = array<i64: 1, 128>}, {pipeline_mode = #tpu.pipeline_mode<synchronous>, transform_indices = @transform_3, window_bounds = array<i64: 1, 128>}, {transform_indices = @transform_4, window_bounds = array<i64: 1, 1>}, {transform_indices = @transform_5, window_bounds = array<i64: 32, 1>}]} {
    %c0 = arith.constant 0 : index
    %c0_0 = arith.constant 0 : index
    %0 = vector.load %arg1[%c0, %c0_0] : memref<32x32xf32, #tpu.memory_space<vmem>>, vector<32x32xf32>
    %c0_1 = arith.constant 0 : index
    %c0_2 = arith.constant 0 : index
    %1 = vector.load %arg2[%c0_1, %c0_2] : memref<32x128xf32, #tpu.memory_space<vmem>>, vector<32x128xf32>
    %cst = arith.constant dense<0.000000e+00> : vector<32x128xf32>
    %2 = tpu.matmul %0, %1, %cst {dimension_numbers = #tpu.dot_dimension_numbers<[1], [0], [0], [1], [0, 0, 1, 1], [], []>} : vector<32x32xf32>, vector<32x128xf32>, vector<32x128xf32> -> vector<32x128xf32>
    %c0_3 = arith.constant 0 : index
    %c0_4 = arith.constant 0 : index
    %3 = vector.load %arg3[%c0_3, %c0_4] : memref<1x128xf32, #tpu.memory_space<vmem>>, vector<1x128xf32>
    %4 = vector.broadcast %3 : vector<1x128xf32> to vector<32x128xf32>
    %5 = arith.addf %2, %4 : vector<32x128xf32>
    %cst_5 = arith.constant 0.000000e+00 : f32
    %6 = vector.broadcast %cst_5 : f32 to vector<32x128xf32>
    %7 = arith.maximumf %5, %6 : vector<32x128xf32>
    %c0_6 = arith.constant 0 : index
    %c0_7 = arith.constant 0 : index
    %8 = vector.load %arg4[%c0_6, %c0_7] : memref<1x128xf32, #tpu.memory_space<vmem>>, vector<1x128xf32>
    %9 = vector.broadcast %8 : vector<1x128xf32> to vector<32x128xf32>
    %10 = arith.mulf %7, %9 : vector<32x128xf32>
    %cst_8 = arith.constant dense<0.000000e+00> : vector<32xf32>
    %11 = vector.multi_reduction <add>, %10, %cst_8 [1] : vector<32x128xf32> to vector<32xf32>
    %12 = vector.shape_cast %11 : vector<32xf32> to vector<32x1xf32>
    %c0_9 = arith.constant 0 : index
    %c0_10 = arith.constant 0 : index
    %13 = memref.load %arg5[%c0_9, %c0_10] : memref<1x1xf32, #tpu.memory_space<smem>>
    %14 = vector.broadcast %13 : f32 to vector<32x1xf32>
    %15 = arith.addf %12, %14 : vector<32x1xf32>
    %c0_11 = arith.constant 0 : index
    %c0_12 = arith.constant 0 : index
    %16 = vector.load %arg6[%c0_11, %c0_12] : memref<32x1xf32, #tpu.memory_space<vmem>>, vector<32x1xf32>
    tpu.vector_store %arg6[%c0_11, %c0_12], %15 {strides = array<i32>} : memref<32x1xf32, #tpu.memory_space<vmem>>, vector<32x1xf32>,
    return
  }
  func.func @transform_0(%arg0: i32) -> (i32, i32) {
    %c0_i32 = arith.constant 0 : i32
    %c0_i32_0 = arith.constant 0 : i32
    return %arg0, %c0_i32 : i32, i32
  }
  func.func @transform_1(%arg0: i32) -> (i32, i32) {
    %c0_i32 = arith.constant 0 : i32
    %c0_i32_0 = arith.constant 0 : i32
    %c0_i32_1 = arith.constant 0 : i32
    return %c0_i32, %c0_i32_0 : i32, i32
  }
  func.func @transform_2(%arg0: i32) -> (i32, i32) {
    %c0_i32 = arith.constant 0 : i32
    %c0_i32_0 = arith.constant 0 : i32
    %c0_i32_1 = arith.constant 0 : i32
    return %c0_i32, %c0_i32_0 : i32, i32
  }
  func.func @transform_3(%arg0: i32) -> (i32, i32) {
    %c0_i32 = arith.constant 0 : i32
    %c0_i32_0 = arith.constant 0 : i32
    %c0_i32_1 = arith.constant 0 : i32
    return %c0_i32, %c0_i32_0 : i32, i32
  }
  func.func @transform_4(%arg0: i32) -> (i32, i32) {
    %c0_i32 = arith.constant 0 : i32
    %c0_i32_0 = arith.constant 0 : i32
    %c0_i32_1 = arith.constant 0 : i32
    return %c0_i32, %c0_i32_0 : i32, i32
  }
  func.func @transform_5(%arg0: i32) -> (i32, i32) {
    %c0_i32 = arith.constant 0 : i32
    %c0_i32_0 = arith.constant 0 : i32
    return %arg0, %c0_i32 : i32, i32
  }
}

</mosaic_0001>

<bundles_post_ra>
// kernel: tpu_custom_call.1
= control target key start
LH: loop header
LB: loop body
LE: loop exit
PB: predicated region body
PF: predicated region fallthrough
CT: control target
= control target key end

     0   :  { %s532_s20 = smov 0   ;;  %s574_s0 = inlined_call_operand.vmem [shape: f32[64,32], index: 0, kind: input, shape index: {}]   ;;  %s575_s1 = inlined_call_operand.vmem [shape: f32[32,128], index: 1, kind: input, shape index: {}]   ;;  %s576_s2 = inlined_call_operand.vmem [shape: f32[1,128], index: 2, kind: input, shape index: {}]   ;;  %s577_s3 = inlined_call_operand.vmem [shape: f32[1,128], index: 3, kind: input, shape index: {}]   ;;  %s578_s4 = inlined_call_operand.<no memory space> [shape: f32[1,1], index: 4, kind: input, shape index: {}]   ;;  %s579_s5 = inlined_call_operand.vmem [shape: f32[64,1], index: 5, kind: output, shape index: {}]  }
   0x1   :  { %10 = sst [smem:[#allocation2]] %s578_s4 }
   0x2 LB: > { %s432_s21 = sadd.s32 4294967295, %s497_s20   ;;  %p436_p0 = scmp.ge.s32.totalorder %s497_s20, 1  ;;  %s497_s20 = sphi %s532_s20, %s16_s20  }
   0x3   : > { %p189_p1 = scmp.lt.s32.totalorder %s497_s20, 3 }
   0x5   : > { %p190_p2 = pnand %p436_p0, %p189_p1 }
   0x6   : > { %v233_v0 = vld [vmem:[%s575_s1] sm:$0xff] (!%p190_p2)  ;;  %v234_v1 = vld [vmem:[%s575_s1 + $0x8] sm:$0xff] (!%p190_p2)  ;;  %v235_v2 = vld [vmem:[%s575_s1 + $0x10] sm:$0xff] (!%p190_p2)  ;;  %s437_s27 = sshll.u32 (!%p190_p2), %s432_s21, 2  ;;  %vm244_vm0 = vcmask (!%p190_p2), 261120   ;;  %s365_s13 = sld [smem:[#allocation2]] (!%p190_p2) }
   0x7   : > { %193 = sbr.rel (%p190_p2) target bundleno = 387 (0x183), region = 40  ;;  %v471_v3 = vpack.c.bf16 (!%p190_p2), %v234_v1, %v233_v0  ;;  %v236_v4 = vld [vmem:[%s575_s1 + $0x18] sm:$0xff] (!%p190_p2)  ;;  %p218_p3 = scmp.lt.s32.totalorder (!%p190_p2), %s437_s27, 7  ;;  %v441_v10 = vld [vmem:[%s576_s2] ss:$0 sm:$0xff] (!%p190_p2)  ;;  %vm371_vm1 = vcmask (!%p190_p2), 7168  }
   0x8   : > { %v475_v5 = vpack.c.bf16 (!%p190_p2), %v236_v4, %v235_v2  ;;  %v446_v19 = vld [vmem:[%s577_s3] ss:$0 sm:$0xff] (!%p190_p2) }
   0x9   : > { %472 = vmatprep.subr.bf16.mxu0 (!%p190_p2), %v471_v3  ;;  %479 = vmatprep.subr.bf16.mxu1 (!%p190_p2), %v471_v3 }
   0xa   : > { %474 = vmatpush3.bf16.msra.mxu0 (!%p190_p2), %v471_v3  ;;  %481 = vmatpush3.bf16.msra.mxu1 (!%p190_p2), %v471_v3 }
   0xb   : > { %476 = vmatprep.subr.bf16.mxu0 (!%p190_p2), %v475_v5  ;;  %480 = vmatprep.subr.bf16.mxu1 (!%p190_p2), %v475_v5 }
   0xc   : > { %v366_v28 = vstv (!%p190_p2), %s365_s13 }
   0xe   : > { %s581_s27 = smov (!%p218_p3, %s437_s27), 7  ;;  %478 = vmatpush3.bf16.msra.mxu0 %v475_v5  ;;  %482 = vmatpush3.bf16.msra.mxu1 %v475_v5 }
   0xf   : > { %s438_s30 = sshll.u32 %s581_s27, 3 }
  0x10   : > { %s221_s8 = scalar_lea.vmem %s574_s0, %s438_s30  ;;  %s227_s16 = scalar_lea.vmem %s579_s5, %s438_s30 }
  0x11   : > { %v229_v6 = vld [vmem:[%s221_s8] sm:$0xff]  ;;  %v231_v7 = vld [vmem:[%s221_s8 + $0x10] sm:$0xff]  ;;  %v230_v8 = vld [vmem:[%s221_s8 + $0x8] sm:$0xff] }
  0x12   : > { %v232_v9 = vld [vmem:[%s221_s8 + $0x18] sm:$0xff]  ;;  %465 = vmatprep.mubr.msk.f32.mxu0 %vm244_vm0, %v229_v6  ;;  %468 = vmatprep.mubr.msk.f32.mxu1 %vm244_vm0, %v231_v7 }
  0x13   : > { %466 = vmatmul.mubr.msk.f32.vlgmr.msra.gmra.mrb[0].mxu0 %vm244_vm0, %v230_v8  ;;  %469 = vmatmul.mubr.msk.f32.vlgmr.msra.gmra.mrb[0].mxu1 %vm244_vm0, %v232_v9 }
  0xe6   : > { %v467_v11 = vpop.f32.mrb[0].mxu0  ;;  %v470_v12 = vpop.f32.mrb[0].mxu1 }
  0xe7   : > { %v323_v13 = vpop.f32.mrb[1].mxu0  ;;  %v333_v14 = vpop.f32.mrb[1].mxu1  ;;  %v329_v15 = vadd.f32 %v467_v11, %v441_v10  ;;  %v339_v16 = vadd.f32 %v470_v12, %v441_v10 }
  0xe8   : > { %v324_v17 = vadd.f32 %v441_v10, %v323_v13  ;;  %v334_v18 = vadd.f32 %v441_v10, %v333_v14 }
  0xe9   : > { %v343_v22 = vmax.f32 %v329_v15, 0.0  ;;  %v345_v23 = vmax.f32 %v339_v16, 0.0 }
  0xea   : > { %v342_v20 = vmax.f32 %v324_v17, 0.0  ;;  %v344_v21 = vmax.f32 %v334_v18, 0.0 }
  0xeb   : > { %v356_v26 = vmul.f32 %v446_v19, %v345_v23  ;;  %v354_v27 = vmul.f32 %v446_v19, %v343_v22 }
  0xec   : > { %v355_v24 = vmul.f32 %v446_v19, %v344_v21  ;;  %v353_v25 = vmul.f32 %v446_v19, %v342_v20 }
  0xee   : > { %361 = vadd.xlane.f32.xlu1 %v355_v24  ;;  %357 = vadd.xlane.f32.xlu0 %v353_v25 }
  0xf2   : > { %363 = vadd.xlane.f32.xlu1 %v356_v26  ;;  %359 = vadd.xlane.f32.xlu0 %v354_v27 }
 0x17b   : > { %v362_v29 = vpop.xlane.xlu1 %361  ;;  %v358_v30 = vpop.xlane.xlu0 %357 }
 0x17c   : > { %v367_v31 = vadd.f32 %v366_v28, %v358_v30  ;;  %v369_v35 = vadd.f32 %v366_v28, %v362_v29 }
 0x17e   : > { %372 = vst.msk [vmem:[%s227_s16] sm:$0xff] %vm371_vm1, %v367_v31  ;;  %374 = vst.msk [vmem:[%s227_s16 + $0x10] sm:$0xff] %vm371_vm1, %v369_v35 }
 0x17f   : > { %v364_v32 = vpop.xlane.xlu1 %363  ;;  %v360_v33 = vpop.xlane.xlu0 %359 }
 0x180   : > { %v368_v34 = vadd.f32 %v366_v28, %v360_v33  ;;  %v370_v36 = vadd.f32 %v366_v28, %v364_v32 }
 0x182   : > { %373 = vst.msk [vmem:[%s227_s16 + $0x8] sm:$0xff] %vm371_vm1, %v368_v34  ;;  %375 = vst.msk [vmem:[%s227_s16 + $0x18] sm:$0xff] %vm371_vm1, %v370_v36 }
 0x183 PF: > { %s16_s20 = sadd.s32 1, %s497_s20  }
 0x184   : > { %p13_p4 = scmp.ge.s32.totalorder %s16_s20, 4  }
 0x186   :  { %15 = sbr.rel (!%p13_p4) target bundleno = 2 (0x2), region = 70 }

</bundles_post_ra>
